<compile_context>
chip_gen: v6e
topology: v6e:2x2x1
jax: 0.10.0
libtpu: 0.0.40
codegen_flags: <defaults>
</compile_context>

<pallas_src>
import functools

import jax
import jax.numpy as jnp
from jax.experimental import pallas as pl
from jax.experimental.pallas import tpu as pltpu


def _round_up(v: int, m: int) -> int:
    return ((v + m - 1) // m) * m


def _sublane_multiple(dtype) -> int:
    itemsize = jnp.dtype(dtype).itemsize
    return {4: 8, 2: 16, 1: 32}.get(itemsize, 8)


def _fused_mlp_kernel(x_ref, *refs, layer_meta, eps):
    """Entire MLP (group) on one (tm, in_pad) batch tile; activations on-chip.

    refs = (w0, b0, g0, bt0, w1, b1, g1, bt1, ..., o_ref)
    layer_meta = static tuple of (real_out, pad_out, use_layer_norm, use_relu).

    Invariant (set up by init_mlp_params): every padded entry of W / bias /
    gamma / beta is exactly zero, hence every padded output column of each
    layer is exactly zero.  That is what makes the mask-free LayerNorm exact.
    """
    o_ref = refs[-1]
    p_refs = refs[:-1]

    y = x_ref[...].astype(jnp.float32)
    for li, (real_out, pad_out, use_ln, use_relu) in enumerate(layer_meta):
        w_ref, b_ref, g_ref, bt_ref = p_refs[4 * li:4 * li + 4]
        w = w_ref[...]
        # MXU matmul (inputs in the stored weight dtype), f32 accumulation.
        z = jnp.dot(y.astype(w.dtype), w, preferred_element_type=jnp.float32)
        z = z + b_ref[...].astype(jnp.float32)
        if use_ln:
            n_pad = pad_out - real_out
            inv_n = 1.0 / real_out
            # Padded columns of z are exactly zero, so the full-width sum is
            # the sum over the real columns -- no lane mask needed.
            mean = jnp.sum(z, axis=-1, keepdims=True) * inv_n
            d = z - mean
            # Two-pass (centered) variance.  Padded columns contribute exactly
            # n_pad * mean^2 to the full-width sum of d^2 -> subtract it.
            ssq = jnp.sum(d * d, axis=-1, keepdims=True) - n_pad * (mean * mean)
            var = jnp.maximum(ssq * inv_n, 0.0)
            z = d * jax.lax.rsqrt(var + eps)
            # gamma/beta are zero on padded columns -> padded output stays 0.
            z = z * g_ref[...].astype(jnp.float32) + bt_ref[...].astype(jnp.float32)
        if use_relu:
            z = jnp.maximum(z, 0.0)
        y = z
    o_ref[...] = y.astype(o_ref.dtype)


def _run_group(x_p, grp, *, tm, eps, out_dtype):
    """One fused pallas_call over a consecutive group of layers."""
    b_pad, in_pad = x_p.shape
    layers_grp = [lyr for lyr, _ in grp]
    meta_grp = [m for _, m in grp]
    assert in_pad == layers_grp[0][0].shape[0]
    out_pad = layers_grp[-1][0].shape[1]

    in_specs = [pl.BlockSpec((tm, in_pad), lambda i: (i, 0))]
    flat = [x_p]
    # Whole-array, un-pipelined VMEM residency: parameters are copied once
    # (single buffer), not double-buffered per batch tile.
    param_spec = pl.BlockSpec(memory_space=pltpu.MemorySpace.VMEM)
    for (w_p, b_p, g_p, bt_p) in layers_grp:
        for a in (w_p, b_p, g_p, bt_p):
            in_specs.append(param_spec)
            flat.append(a)

    layer_meta = tuple(
        (m["real_out"], lyr[0].shape[1], m["use_layer_norm"], m["use_relu"])
        for lyr, m in grp)
    kernel = functools.partial(_fused_mlp_kernel, layer_meta=layer_meta, eps=eps)

    # --- VMEM accounting: params (1x) + double-buffered in/out tiles + f32
    #     intermediates, with ~25% headroom; clamped to fit every generation.
    itemsize = jnp.dtype(out_dtype).itemsize
    param_bytes = sum(int(a.size) * a.dtype.itemsize
                      for lyr in layers_grp for a in lyr)
    max_pad = max([in_pad] + [lyr[0].shape[1] for lyr in layers_grp])
    act_bytes = 2 * tm * in_pad * itemsize + 2 * tm * out_pad * itemsize
    scratch_bytes = 4 * tm * max_pad * 4  # f32 per-layer temporaries
    needed = int((param_bytes + act_bytes + scratch_bytes) * 1.25)
    vmem_limit = int(min(max(needed, 32 * 2**20), 64 * 2**20))

    flops = 2 * b_pad * sum(int(lyr[0].shape[0]) * int(lyr[0].shape[1])
                            for lyr in layers_grp)
    transcendentals = b_pad * sum(1 for m in meta_grp if m["use_layer_norm"])
    bytes_accessed = (param_bytes + b_pad * in_pad * itemsize
                      + b_pad * out_pad * itemsize)

    return pl.pallas_call(
        kernel,
        out_shape=jax.ShapeDtypeStruct((b_pad, out_pad), out_dtype),
        grid=(b_pad // tm,),
        in_specs=in_specs,
        out_specs=pl.BlockSpec((tm, out_pad), lambda i: (i, 0)),
        compiler_params=pltpu.CompilerParams(
            dimension_semantics=("parallel",),   # megacore split on v7x
            vmem_limit_bytes=vmem_limit),
        cost_estimate=pl.CostEstimate(
            flops=flops,
            transcendentals=transcendentals,
            bytes_accessed=bytes_accessed),
    )(*flat)


def mlp_forward(x, layers, meta, *, eps=1e-5, block_batch=512,
                param_vmem_budget=24 * 2**20):
    """Run the fused MLP.  `layers` holds pre-padded parameter arrays, `meta`
    the static per-layer config.  If the total resident parameter bytes exceed
    `param_vmem_budget`, the net is split into chained fused pallas_calls."""
    assert layers, "empty MLP"
    batch, in_f = x.shape
    assert in_f == meta[0]["real_in"]
    in_pad0 = layers[0][0].shape[0]
    out_f = meta[-1]["real_out"]

    # Batch tile: multiple of the sublane packing for the activation dtype,
    # capped by block_batch, and halved if the grid would otherwise have a
    # single step (so v7x's second TensorCore gets work).
    sub = _sublane_multiple(x.dtype)
    tm = min(_round_up(batch, sub), block_batch)
    b_pad = _round_up(batch, tm)
    if b_pad // tm < 2 and batch > sub:
        half = _round_up((b_pad + 1) // 2, sub)
        if half < tm:
            tm = half
            b_pad = _round_up(batch, tm)

    # Zero-pad activations once: padded W rows are zero so extra feature
    # columns contribute nothing; padded batch rows are sliced off at the end.
    x_p = jnp.zeros((b_pad, in_pad0), x.dtype).at[:batch, :in_f].set(x)

    # Group consecutive layers so each pallas_call keeps its parameters
    # VMEM-resident within budget.  Usually this is a single group.
    # TODO(synk): N-axis (output-feature) tiling for a single layer whose
    # weight alone exceeds physical VMEM; group splitting handles the rest.
    groups, cur, cur_bytes = [], [], 0
    for lyr, m in zip(layers, meta):
        lb = sum(int(a.size) * a.dtype.itemsize for a in lyr)
        if cur and cur_bytes + lb > param_vmem_budget:
            groups.append(cur)
            cur, cur_bytes = [], 0
        cur.append((lyr, m))
        cur_bytes += lb
    groups.append(cur)

    y_p = x_p
    for grp in groups:
        y_p = _run_group(y_p, grp, tm=tm, eps=eps, out_dtype=x.dtype)
    return y_p[:batch, :out_f]


def init_mlp_params(key, in_features, out_features, hidden_features,
                    num_layers, layer_norm=False, bias=True,
                    matmul_dtype=jnp.float32):
    """PyTorch-default-matching params, pre-padded so every feature axis is a
    multiple of 128 (lane-dense).  INVARIANT: all padded entries of W, bias,
    gamma, beta are exactly zero -- the kernel's mask-free LayerNorm and the
    cross-group chaining rely on it.  Set matmul_dtype=jnp.bfloat16 on
    v6e/v7x to halve weight DMA/VMEM and hit the bf16 MXU."""
    layers = []
    meta = []
    cur_in = in_features
    for li in range(num_layers):
        is_last = li == num_layers - 1
        out_f = out_features if is_last else hidden_features
        key, kw, kb = jax.random.split(key, 3)
        bound = 1.0 / (cur_in ** 0.5)  # nn.Linear default U(-1/sqrt(fan_in), .)
        w = jax.random.uniform(kw, (cur_in, out_f), jnp.float32, -bound, bound)
        if bias:
            bvec = jax.random.uniform(kb, (out_f,), jnp.float32, -bound, bound)
        else:
            bvec = jnp.zeros((out_f,), jnp.float32)
        in_pad = _round_up(cur_in, 128)
        out_pad = _round_up(out_f, 128)
        w_p = jnp.zeros((in_pad, out_pad), matmul_dtype)
        w_p = w_p.at[:cur_in, :out_f].set(w.astype(matmul_dtype))
        b_p = jnp.zeros((1, out_pad), jnp.float32).at[0, :out_f].set(bvec)
        g_p = jnp.zeros((1, out_pad), jnp.float32).at[0, :out_f].set(1.0)
        bt_p = jnp.zeros((1, out_pad), jnp.float32)
        layers.append((w_p, b_p, g_p, bt_p))
        meta.append(dict(real_in=cur_in, real_out=out_f,
                         use_layer_norm=layer_norm and not is_last,
                         use_relu=not is_last))
        cur_in = out_f
    return layers, meta


def mlp_forward_ref(x, layers, meta, eps=1e-5):
    """Pure-JAX reference of the same forward pass (unpadded math)."""
    y = x.astype(jnp.float32)
    for (w_p, b_p, g_p, bt_p), m in zip(layers, meta):
        ri, ro = m["real_in"], m["real_out"]
        y = y @ w_p[:ri, :ro].astype(jnp.float32) + b_p[0, :ro]
        if m["use_layer_norm"]:
            mu = jnp.mean(y, axis=-1, keepdims=True)
            var = jnp.mean((y - mu) ** 2, axis=-1, keepdims=True)
            y = (y - mu) / jnp.sqrt(var + eps)
            y = y * g_p[0, :ro] + bt_p[0, :ro]
        if m["use_relu"]:
            y = jnp.maximum(y, 0.0)
    return y


if __name__ == "__main__":
    key = jax.random.PRNGKey(0)
    k_in, k_p, k_in2, k_p2 = jax.random.split(key, 4)

    # Case 1: small MLP with LayerNorm (batch=8, 32 -> 64 -> 64 -> 16).
    x = jax.random.normal(k_in, (8, 32), jnp.float32)
    layers, meta = init_mlp_params(k_p, in_features=32, out_features=16,
                                   hidden_features=64, num_layers=3,
                                   layer_norm=True, bias=True)
    out = jax.block_until_ready(mlp_forward(x, layers, meta))
    ref = mlp_forward_ref(x, layers, meta)
    assert out.shape == (8, 16)
    assert jnp.allclose(out, ref, atol=1e-4, rtol=1e-4), "case 1 mismatch"

    # Case 2: exercises batch tiling (grid > 1) + batch/feature padding.
    x2 = jax.random.normal(k_in2, (272, 48), jnp.float32)
    layers2, meta2 = init_mlp_params(k_p2, in_features=48, out_features=24,
                                     hidden_features=96, num_layers=2,
                                     layer_norm=False, bias=True)
    out2 = jax.block_until_ready(
        mlp_forward(x2, layers2, meta2, block_batch=128))
    ref2 = mlp_forward_ref(x2, layers2, meta2)
    assert out2.shape == (272, 24)
    assert jnp.allclose(out2, ref2, atol=1e-4, rtol=1e-4), "case 2 mismatch"

    # Case 3: force the chained-group fallback (params "exceed" a tiny budget
    # -> one fused pallas_call per layer, padded activations chained exactly).
    out3 = jax.block_until_ready(
        mlp_forward(x, layers, meta, param_vmem_budget=1))
    assert jnp.allclose(out3, ref, atol=1e-4, rtol=1e-4), "case 3 mismatch"

    print("KERNEL_OK")
</pallas_src>

<mosaic_0001>
module attributes {stable_mosaic.version = 11 : i64} {
  func.func @_fused_mlp_kernel(%arg0: i32, %arg1: memref<8x128xf32, #tpu.memory_space<vmem>>, %arg2: memref<128x128xf32, #tpu.memory_space<vmem>>, %arg3: memref<1x128xf32, #tpu.memory_space<vmem>>, %arg4: memref<1x128xf32, #tpu.memory_space<vmem>>, %arg5: memref<1x128xf32, #tpu.memory_space<vmem>>, %arg6: memref<128x128xf32, #tpu.memory_space<vmem>>, %arg7: memref<1x128xf32, #tpu.memory_space<vmem>>, %arg8: memref<1x128xf32, #tpu.memory_space<vmem>>, %arg9: memref<1x128xf32, #tpu.memory_space<vmem>>, %arg10: memref<128x128xf32, #tpu.memory_space<vmem>>, %arg11: memref<1x128xf32, #tpu.memory_space<vmem>>, %arg12: memref<1x128xf32, #tpu.memory_space<vmem>>, %arg13: memref<1x128xf32, #tpu.memory_space<vmem>>, %arg14: memref<8x128xf32, #tpu.memory_space<vmem>>) attributes {dimension_semantics = [#tpu.dimension_semantics<parallel>], iteration_bounds = array<i64: 1>, scalar_prefetch = 0 : i64, scratch_operands = 0 : i64, tpu.core_type = #tpu.core_type<tc>, window_params = [{transform_indices = @transform_0, window_bounds = array<i64: 8, 128>}, {pipeline_mode = #tpu.pipeline_mode<synchronous>, transform_indices = @transform_1, window_bounds = array<i64: 128, 128>}, {pipeline_mode = #tpu.pipeline_mode<synchronous>, transform_indices = @transform_2, window_bounds = array<i64: 1, 128>}, {pipeline_mode = #tpu.pipeline_mode<synchronous>, transform_indices = @transform_3, window_bounds = array<i64: 1, 128>}, {pipeline_mode = #tpu.pipeline_mode<synchronous>, transform_indices = @transform_4, window_bounds = array<i64: 1, 128>}, {pipeline_mode = #tpu.pipeline_mode<synchronous>, transform_indices = @transform_5, window_bounds = array<i64: 128, 128>}, {pipeline_mode = #tpu.pipeline_mode<synchronous>, transform_indices = @transform_6, window_bounds = array<i64: 1, 128>}, {pipeline_mode = #tpu.pipeline_mode<synchronous>, transform_indices = @transform_7, window_bounds = array<i64: 1, 128>}, {pipeline_mode = #tpu.pipeline_mode<synchronous>, transform_indices = @transform_8, window_bounds = array<i64: 1, 128>}, {pipeline_mode = #tpu.pipeline_mode<synchronous>, transform_indices = @transform_9, window_bounds = array<i64: 128, 128>}, {pipeline_mode = #tpu.pipeline_mode<synchronous>, transform_indices = @transform_10, window_bounds = array<i64: 1, 128>}, {pipeline_mode = #tpu.pipeline_mode<synchronous>, transform_indices = @transform_11, window_bounds = array<i64: 1, 128>}, {pipeline_mode = #tpu.pipeline_mode<synchronous>, transform_indices = @transform_12, window_bounds = array<i64: 1, 128>}, {transform_indices = @transform_13, window_bounds = array<i64: 8, 128>}]} {
    %c0 = arith.constant 0 : index
    %c0_0 = arith.constant 0 : index
    %0 = vector.load %arg1[%c0, %c0_0] : memref<8x128xf32, #tpu.memory_space<vmem>>, vector<8x128xf32>
    %c0_1 = arith.constant 0 : index
    %c0_2 = arith.constant 0 : index
    %1 = vector.load %arg2[%c0_1, %c0_2] : memref<128x128xf32, #tpu.memory_space<vmem>>, vector<128x128xf32>
    %cst = arith.constant dense<0.000000e+00> : vector<8x128xf32>
    %2 = tpu.matmul %0, %1, %cst {dimension_numbers = #tpu.dot_dimension_numbers<[1], [0], [0], [1], [0, 0, 1, 1], [], []>} : vector<8x128xf32>, vector<128x128xf32>, vector<8x128xf32> -> vector<8x128xf32>
    %c0_3 = arith.constant 0 : index
    %c0_4 = arith.constant 0 : index
    %3 = vector.load %arg3[%c0_3, %c0_4] : memref<1x128xf32, #tpu.memory_space<vmem>>, vector<1x128xf32>
    %4 = vector.broadcast %3 : vector<1x128xf32> to vector<8x128xf32>
    %5 = arith.addf %2, %4 : vector<8x128xf32>
    %cst_5 = arith.constant dense<0.000000e+00> : vector<8xf32>
    %6 = vector.multi_reduction <add>, %5, %cst_5 [1] : vector<8x128xf32> to vector<8xf32>
    %7 = vector.shape_cast %6 : vector<8xf32> to vector<8x1xf32>
    %cst_6 = arith.constant 1.562500e-02 : f32
    %8 = vector.broadcast %cst_6 : f32 to vector<8x1xf32>
    %9 = arith.mulf %7, %8 : vector<8x1xf32>
    %10 = vector.broadcast %9 : vector<8x1xf32> to vector<8x128xf32>
    %11 = arith.subf %5, %10 : vector<8x128xf32>
    %12 = arith.mulf %11, %11 : vector<8x128xf32>
    %cst_7 = arith.constant dense<0.000000e+00> : vector<8xf32>
    %13 = vector.multi_reduction <add>, %12, %cst_7 [1] : vector<8x128xf32> to vector<8xf32>
    %14 = vector.shape_cast %13 : vector<8xf32> to vector<8x1xf32>
    %15 = arith.mulf %9, %9 : vector<8x1xf32>
    %cst_8 = arith.constant 6.400000e+01 : f32
    %16 = vector.broadcast %cst_8 : f32 to vector<8x1xf32>
    %17 = arith.mulf %16, %15 : vector<8x1xf32>
    %18 = arith.subf %14, %17 : vector<8x1xf32>
    %cst_9 = arith.constant 1.562500e-02 : f32
    %19 = vector.broadcast %cst_9 : f32 to vector<8x1xf32>
    %20 = arith.mulf %18, %19 : vector<8x1xf32>
    %cst_10 = arith.constant 0.000000e+00 : f32
    %21 = vector.broadcast %cst_10 : f32 to vector<8x1xf32>
    %22 = arith.maximumf %20, %21 : vector<8x1xf32>
    %cst_11 = arith.constant 9.99999974E-6 : f32
    %23 = vector.broadcast %cst_11 : f32 to vector<8x1xf32>
    %24 = arith.addf %22, %23 : vector<8x1xf32>
    %25 = math.rsqrt %24 : vector<8x1xf32>
    %26 = vector.broadcast %25 : vector<8x1xf32> to vector<8x128xf32>
    %27 = arith.mulf %11, %26 : vector<8x128xf32>
    %c0_12 = arith.constant 0 : index
    %c0_13 = arith.constant 0 : index
    %28 = vector.load %arg4[%c0_12, %c0_13] : memref<1x128xf32, #tpu.memory_space<vmem>>, vector<1x128xf32>
    %29 = vector.broadcast %28 : vector<1x128xf32> to vector<8x128xf32>
    %30 = arith.mulf %27, %29 : vector<8x128xf32>
    %c0_14 = arith.constant 0 : index
    %c0_15 = arith.constant 0 : index
    %31 = vector.load %arg5[%c0_14, %c0_15] : memref<1x128xf32, #tpu.memory_space<vmem>>, vector<1x128xf32>
    %32 = vector.broadcast %31 : vector<1x128xf32> to vector<8x128xf32>
    %33 = arith.addf %30, %32 : vector<8x128xf32>
    %cst_16 = arith.constant 0.000000e+00 : f32
    %34 = vector.broadcast %cst_16 : f32 to vector<8x128xf32>
    %35 = arith.maximumf %33, %34 : vector<8x128xf32>
    %c0_17 = arith.constant 0 : index
    %c0_18 = arith.constant 0 : index
    %36 = vector.load %arg6[%c0_17, %c0_18] : memref<128x128xf32, #tpu.memory_space<vmem>>, vector<128x128xf32>
    %cst_19 = arith.constant dense<0.000000e+00> : vector<8x128xf32>
    %37 = tpu.matmul %35, %36, %cst_19 {dimension_numbers = #tpu.dot_dimension_numbers<[1], [0], [0], [1], [0, 0, 1, 1], [], []>} : vector<8x128xf32>, vector<128x128xf32>, vector<8x128xf32> -> vector<8x128xf32>
    %c0_20 = arith.constant 0 : index
    %c0_21 = arith.constant 0 : index
    %38 = vector.load %arg7[%c0_20, %c0_21] : memref<1x128xf32, #tpu.memory_space<vmem>>, vector<1x128xf32>
    %39 = vector.broadcast %38 : vector<1x128xf32> to vector<8x128xf32>
    %40 = arith.addf %37, %39 : vector<8x128xf32>
    %cst_22 = arith.constant dense<0.000000e+00> : vector<8xf32>
    %41 = vector.multi_reduction <add>, %40, %cst_22 [1] : vector<8x128xf32> to vector<8xf32>
    %42 = vector.shape_cast %41 : vector<8xf32> to vector<8x1xf32>
    %cst_23 = arith.constant 1.562500e-02 : f32
    %43 = vector.broadcast %cst_23 : f32 to vector<8x1xf32>
    %44 = arith.mulf %42, %43 : vector<8x1xf32>
    %45 = vector.broadcast %44 : vector<8x1xf32> to vector<8x128xf32>
    %46 = arith.subf %40, %45 : vector<8x128xf32>
    %47 = arith.mulf %46, %46 : vector<8x128xf32>
    %cst_24 = arith.constant dense<0.000000e+00> : vector<8xf32>
    %48 = vector.multi_reduction <add>, %47, %cst_24 [1] : vector<8x128xf32> to vector<8xf32>
    %49 = vector.shape_cast %48 : vector<8xf32> to vector<8x1xf32>
    %50 = arith.mulf %44, %44 : vector<8x1xf32>
    %cst_25 = arith.constant 6.400000e+01 : f32
    %51 = vector.broadcast %cst_25 : f32 to vector<8x1xf32>
    %52 = arith.mulf %51, %50 : vector<8x1xf32>
    %53 = arith.subf %49, %52 : vector<8x1xf32>
    %cst_26 = arith.constant 1.562500e-02 : f32
    %54 = vector.broadcast %cst_26 : f32 to vector<8x1xf32>
    %55 = arith.mulf %53, %54 : vector<8x1xf32>
    %cst_27 = arith.constant 0.000000e+00 : f32
    %56 = vector.broadcast %cst_27 : f32 to vector<8x1xf32>
    %57 = arith.maximumf %55, %56 : vector<8x1xf32>
    %cst_28 = arith.constant 9.99999974E-6 : f32
    %58 = vector.broadcast %cst_28 : f32 to vector<8x1xf32>
    %59 = arith.addf %57, %58 : vector<8x1xf32>
    %60 = math.rsqrt %59 : vector<8x1xf32>
    %61 = vector.broadcast %60 : vector<8x1xf32> to vector<8x128xf32>
    %62 = arith.mulf %46, %61 : vector<8x128xf32>
    %c0_29 = arith.constant 0 : index
    %c0_30 = arith.constant 0 : index
    %63 = vector.load %arg8[%c0_29, %c0_30] : memref<1x128xf32, #tpu.memory_space<vmem>>, vector<1x128xf32>
    %64 = vector.broadcast %63 : vector<1x128xf32> to vector<8x128xf32>
    %65 = arith.mulf %62, %64 : vector<8x128xf32>
    %c0_31 = arith.constant 0 : index
    %c0_32 = arith.constant 0 : index
    %66 = vector.load %arg9[%c0_31, %c0_32] : memref<1x128xf32, #tpu.memory_space<vmem>>, vector<1x128xf32>
    %67 = vector.broadcast %66 : vector<1x128xf32> to vector<8x128xf32>
    %68 = arith.addf %65, %67 : vector<8x128xf32>
    %cst_33 = arith.constant 0.000000e+00 : f32
    %69 = vector.broadcast %cst_33 : f32 to vector<8x128xf32>
    %70 = arith.maximumf %68, %69 : vector<8x128xf32>
    %c0_34 = arith.constant 0 : index
    %c0_35 = arith.constant 0 : index
    %71 = vector.load %arg10[%c0_34, %c0_35] : memref<128x128xf32, #tpu.memory_space<vmem>>, vector<128x128xf32>
    %cst_36 = arith.constant dense<0.000000e+00> : vector<8x128xf32>
    %72 = tpu.matmul %70, %71, %cst_36 {dimension_numbers = #tpu.dot_dimension_numbers<[1], [0], [0], [1], [0, 0, 1, 1], [], []>} : vector<8x128xf32>, vector<128x128xf32>, vector<8x128xf32> -> vector<8x128xf32>
    %c0_37 = arith.constant 0 : index
    %c0_38 = arith.constant 0 : index
    %73 = vector.load %arg11[%c0_37, %c0_38] : memref<1x128xf32, #tpu.memory_space<vmem>>, vector<1x128xf32>
    %74 = vector.broadcast %73 : vector<1x128xf32> to vector<8x128xf32>
    %75 = arith.addf %72, %74 : vector<8x128xf32>
    %c0_39 = arith.constant 0 : index
    %c0_40 = arith.constant 0 : index
    %76 = vector.load %arg14[%c0_39, %c0_40] : memref<8x128xf32, #tpu.memory_space<vmem>>, vector<8x128xf32>
    tpu.vector_store %arg14[%c0_39, %c0_40], %75 {strides = array<i32>} : memref<8x128xf32, #tpu.memory_space<vmem>>, vector<8x128xf32>,
    return
  }
  func.func @transform_0(%arg0: i32) -> (i32, i32) {
    %c0_i32 = arith.constant 0 : i32
    %c0_i32_0 = arith.constant 0 : i32
    return %arg0, %c0_i32 : i32, i32
  }
  func.func @transform_1(%arg0: i32) -> (i32, i32) {
    %c0_i32 = arith.constant 0 : i32
    %c0_i32_0 = arith.constant 0 : i32
    %c0_i32_1 = arith.constant 0 : i32
    return %c0_i32, %c0_i32_0 : i32, i32
  }
  func.func @transform_2(%arg0: i32) -> (i32, i32) {
    %c0_i32 = arith.constant 0 : i32
    %c0_i32_0 = arith.constant 0 : i32
    %c0_i32_1 = arith.constant 0 : i32
    return %c0_i32, %c0_i32_0 : i32, i32
  }
  func.func @transform_3(%arg0: i32) -> (i32, i32) {
    %c0_i32 = arith.constant 0 : i32
    %c0_i32_0 = arith.constant 0 : i32
    %c0_i32_1 = arith.constant 0 : i32
    return %c0_i32, %c0_i32_0 : i32, i32
  }
  func.func @transform_4(%arg0: i32) -> (i32, i32) {
    %c0_i32 = arith.constant 0 : i32
    %c0_i32_0 = arith.constant 0 : i32
    %c0_i32_1 = arith.constant 0 : i32
    return %c0_i32, %c0_i32_0 : i32, i32
  }
  func.func @transform_5(%arg0: i32) -> (i32, i32) {
    %c0_i32 = arith.constant 0 : i32
    %c0_i32_0 = arith.constant 0 : i32
    %c0_i32_1 = arith.constant 0 : i32
    return %c0_i32, %c0_i32_0 : i32, i32
  }
  func.func @transform_6(%arg0: i32) -> (i32, i32) {
    %c0_i32 = arith.constant 0 : i32
    %c0_i32_0 = arith.constant 0 : i32
    %c0_i32_1 = arith.constant 0 : i32
    return %c0_i32, %c0_i32_0 : i32, i32
  }
  func.func @transform_7(%arg0: i32) -> (i32, i32) {
    %c0_i32 = arith.constant 0 : i32
    %c0_i32_0 = arith.constant 0 : i32
    %c0_i32_1 = arith.constant 0 : i32
    return %c0_i32, %c0_i32_0 : i32, i32
  }
  func.func @transform_8(%arg0: i32) -> (i32, i32) {
    %c0_i32 = arith.constant 0 : i32
    %c0_i32_0 = arith.constant 0 : i32
    %c0_i32_1 = arith.constant 0 : i32
    return %c0_i32, %c0_i32_0 : i32, i32
  }
  func.func @transform_9(%arg0: i32) -> (i32, i32) {
    %c0_i32 = arith.constant 0 : i32
    %c0_i32_0 = arith.constant 0 : i32
    %c0_i32_1 = arith.constant 0 : i32
    return %c0_i32, %c0_i32_0 : i32, i32
  }
  func.func @transform_10(%arg0: i32) -> (i32, i32) {
    %c0_i32 = arith.constant 0 : i32
    %c0_i32_0 = arith.constant 0 : i32
    %c0_i32_1 = arith.constant 0 : i32
    return %c0_i32, %c0_i32_0 : i32, i32
  }
  func.func @transform_11(%arg0: i32) -> (i32, i32) {
    %c0_i32 = arith.constant 0 : i32
    %c0_i32_0 = arith.constant 0 : i32
    %c0_i32_1 = arith.constant 0 : i32
    return %c0_i32, %c0_i32_0 : i32, i32
  }
  func.func @transform_12(%arg0: i32) -> (i32, i32) {
    %c0_i32 = arith.constant 0 : i32
    %c0_i32_0 = arith.constant 0 : i32
    %c0_i32_1 = arith.constant 0 : i32
    return %c0_i32, %c0_i32_0 : i32, i32
  }
  func.func @transform_13(%arg0: i32) -> (i32, i32) {
    %c0_i32 = arith.constant 0 : i32
    %c0_i32_0 = arith.constant 0 : i32
    return %arg0, %c0_i32 : i32, i32
  }
}

</mosaic_0001>

<bundles_post_ra>
// kernel: tpu_custom_call.1
= control target key start
LH: loop header
LB: loop body
LE: loop exit
PB: predicated region body
PF: predicated region fallthrough
CT: control target
= control target key end

     0   :  { %18 = vsyncpa [#allocation3], 0  ;;  %s922_s0 = inlined_call_operand.hbm [shape: f32[8,128], index: 0, kind: input, shape index: {}]   ;;  %s923_s1 = inlined_call_operand.hbm [shape: f32[128,128], index: 1, kind: input, shape index: {}]   ;;  %s924_s2 = inlined_call_operand.vmem [shape: f32[1,128], index: 2, kind: input, shape index: {}]   ;;  %s925_s3 = inlined_call_operand.vmem [shape: f32[1,128], index: 3, kind: input, shape index: {}]   ;;  %s926_s4 = inlined_call_operand.vmem [shape: f32[1,128], index: 4, kind: input, shape index: {}]   ;;  %s927_s5 = inlined_call_operand.hbm [shape: f32[128,128], index: 5, kind: input, shape index: {}]   ;;  %s928_s6 = inlined_call_operand.vmem [shape: f32[1,128], index: 6, kind: input, shape index: {}]   ;;  %s929_s7 = inlined_call_operand.vmem [shape: f32[1,128], index: 7, kind: input, shape index: {}]   ;;  %s930_s8 = inlined_call_operand.vmem [shape: f32[1,128], index: 8, kind: input, shape index: {}]   ;;  %s931_s9 = inlined_call_operand.hbm [shape: f32[128,128], index: 9, kind: input, shape index: {}]   ;;  %s932_s10 = inlined_call_operand.vmem [shape: f32[1,128], index: 10, kind: input, shape index: {}]   ;;  %s933_s11 = inlined_call_operand.vmem [shape: f32[1,128], index: 11, kind: input, shape index: {}]   ;;  %s934_s12 = inlined_call_operand.vmem [shape: f32[1,128], index: 12, kind: input, shape index: {}]   ;;  %s935_s13 = inlined_call_operand.hbm [shape: f32[8,128], index: 13, kind: output, shape index: {}]  }
   0x1   :  { %19 = vsyncpa [#allocation6], 0 }
   0x2   :  { %20 = vsyncpa [#allocation9], 0 }
   0x3   :  { %21 = vsyncpa [#allocation4], 0  ;;  %s744_s25 = smov [#allocation5]  }
   0x4   :  { %s37_s26 = sshll.u32 %s744_s25, 4  ;;  %s38_s26 = int_to_ptr.vmem [resolvable:$true] %s37_s26 }
   0x5   :  { %s644_s27 = scalar_lea.vmem %s38_s26, 2048  ;;  %p649_p1 = scmp.lt.s32.totalorder %s38_s26, %s38_s26 }
   0x6   :  { %p645_p0 = scmp.ne.s32.totalorder %s38_s26, %s644_s27  ;;  %p650_p2 = scmp.lt.s32.totalorder %s644_s27, %s644_s27 }
   0x8   :  { %p651_p3 = por %p650_p2, %p649_p1 }
   0xa   :  { %p652_p4 = pnand %p651_p3, %p645_p0 }
   0xc   :  { %655 = shalt.err (!%p652_p4)
}
   0xd   :  { %s745_s11 = smov 128   ;;  %s746_s28 = smov 8  }
   0xe   :  { %43 = dma.hbm_to_vmem [thread:$0]  %s923_s1, 2048, %s38_s26, [#allocation6], %s745_s11, %s745_s11, %s746_s28  }
   0xf   :  { %s747_s30 = smov [#allocation2]   ;;  %s748_s15 = smov [#allocation7]  }
  0x10   :  { %s28_s14 = sshll.u32 %s747_s30, 4  ;;  %s55_s16 = sshll.u32 %s748_s15, 4  ;;  %s29_s14 = int_to_ptr.vmem [resolvable:$true] %s28_s14  ;;  %s56_s16 = int_to_ptr.vmem [resolvable:$true] %s55_s16 }
  0x11   :  { %s664_s17 = scalar_lea.vmem %s29_s14, 128  ;;  %p669_p6 = scmp.lt.s32.totalorder %s29_s14, %s29_s14 }
  0x12   :  { %p665_p5 = scmp.ne.s32.totalorder %s29_s14, %s664_s17  ;;  %p670_p7 = scmp.lt.s32.totalorder %s664_s17, %s664_s17 }
  0x14   :  { %p671_p8 = por %p670_p7, %p669_p6 }
  0x16   :  { %p672_p9 = pnand %p671_p8, %p665_p5 }
  0x18   :  { %675 = shalt.err (!%p672_p9)
}
  0x19   :  { %31 = dma.hbm_to_vmem [thread:$0]  %s922_s0, 128, %s29_s14, [#allocation3]  }
  0x1a   :  { %s684_s20 = scalar_lea.vmem %s56_s16, 2048  ;;  %p689_p11 = scmp.lt.s32.totalorder %s56_s16, %s56_s16 }
  0x1b   :  { %p685_p10 = scmp.ne.s32.totalorder %s56_s16, %s684_s20  ;;  %p690_p12 = scmp.lt.s32.totalorder %s684_s20, %s684_s20 }
  0x1d   :  { %p691_p13 = por %p690_p12, %p689_p11 }
  0x1f   :  { %p692_p0 = pnand %p691_p13, %p685_p10 }
  0x21   :  { %695 = shalt.err (!%p692_p0)
}
  0x22   :  { %61 = dma.hbm_to_vmem [thread:$0]  %s927_s5, 2048, %s56_s16, [#allocation6], %s745_s11, %s745_s11, %s746_s28  }
  0x23   :  { %s749_s22 = smov [#allocation8]  }
  0x24   :  { %s73_s23 = sshll.u32 %s749_s22, 4  ;;  %s74_s23 = int_to_ptr.vmem [resolvable:$true] %s73_s23 }
  0x25   :  { %s704_s24 = scalar_lea.vmem %s74_s23, 2048  ;;  %p709_p2 = scmp.lt.s32.totalorder %s74_s23, %s74_s23 }
  0x26   :  { %p705_p1 = scmp.ne.s32.totalorder %s74_s23, %s704_s24  ;;  %p710_p3 = scmp.lt.s32.totalorder %s704_s24, %s704_s24 }
  0x28   :  { %p711_p4 = por %p710_p3, %p709_p2 }
  0x2a   :  { %p712_p5 = pnand %p711_p4, %p705_p1 }
  0x2c   :  { %715 = shalt.err (!%p712_p5)
}
  0x2d   :  { %79 = dma.hbm_to_vmem [thread:$0]  %s931_s9, 2048, %s74_s23, [#allocation9], %s745_s11, %s745_s11, %s746_s28  }
  0x2e   :  { %736 = dma.done.wait [#allocation3], 128  }
  0x2f   :  { %737 = vsyncadd [#allocation3], 4294967168 }
  0x30   :  { %738 = dma.done.wait [#allocation6], 4096  }
  0x31   :  { %739 = vsyncadd [#allocation6], 4294963200 }
  0x32   :  { %740 = dma.done.wait [#allocation9], 2048  }
  0x33   :  { %741 = vsyncadd [#allocation9], 4294965248  ;;  %v750_v0 = vmov 0.0   ;;  %vm751_vm0 = vmmov 0   ;;  %v114_v1 = vld [vmem:[#allocation5 + $0x78] sm:$0xff]  ;;  %v113_v2 = vld [vmem:[#allocation5 + $0x70] sm:$0xff] }
  0x34   :  { %518 = vmatprep.subr.mxu0 %v750_v0  ;;  %550 = vmatprep.mubr.msk.f32.mxu0 %vm751_vm0, %v750_v0  ;;  %v112_v3 = vld [vmem:[#allocation5 + $0x68] sm:$0xff]  ;;  %v111_v4 = vld [vmem:[#allocation5 + $0x60] sm:$0xff]  ;;  %v110_v5 = vld [vmem:[#allocation5 + $0x58] sm:$0xff]  ;;  %s752_s15 = smov [#allocation10]  }
  0x35   :  { %553 = vmatprep.subr.mxu1 %v750_v0  ;;  %585 = vmatprep.mubr.msk.f32.mxu1 %vm751_vm0, %v750_v0  ;;  %v109_v6 = vld [vmem:[#allocation5 + $0x50] sm:$0xff]  ;;  %v108_v7 = vld [vmem:[#allocation5 + $0x48] sm:$0xff]  ;;  %v107_v8 = vld [vmem:[#allocation5 + $0x40] sm:$0xff]  ;;  %s449_s16 = sshll.u32 %s752_s15, 4  ;;  %s450_s16 = int_to_ptr.vmem [resolvable:$true] %s449_s16 }
  0x36   :  { %519 = vmatpush3.msra.mxu0 %v114_v1  ;;  %v106_v9 = vld [vmem:[#allocation5 + $0x38] sm:$0xff]  ;;  %v105_v10 = vld [vmem:[#allocation5 + $0x30] sm:$0xff]  ;;  %v104_v11 = vld [vmem:[#allocation5 + $0x28] sm:$0xff]  ;;  %p721_p7 = scmp.lt.s32.totalorder %s450_s16, %s450_s16 }
  0x37   :  { %520 = vmatprep.subr.mxu0 %v750_v0  ;;  %v103_v12 = vld [vmem:[#allocation5 + $0x20] sm:$0xff]  ;;  %v102_v13 = vld [vmem:[#allocation5 + $0x18] sm:$0xff]  ;;  %v101_v14 = vld [vmem:[#allocation5 + $0x10] sm:$0xff] }
  0x38   :  { %521 = vmatpush3.msra.mxu0 %v113_v2  ;;  %v100_v15 = vld [vmem:[#allocation5 + $0x8] sm:$0xff]  ;;  %v99_v16 = vld [vmem:[#allocation5] sm:$0xff]  ;;  %v98_v17 = vld [vmem:[#allocation2] sm:$0xff] }
  0x39   :  { %522 = vmatprep.subr.mxu0 %v750_v0  ;;  %v460_v18 = vld [vmem:[%s924_s2] ss:$0 sm:$0xff]  ;;  %v238_v27 = vld [vmem:[#allocation7 + $0x70] sm:$0xff]  ;;  %v237_v28 = vld [vmem:[#allocation7 + $0x68] sm:$0xff] }
  0x3a   :  { %523 = vmatpush3.msra.mxu0 %v112_v3  ;;  %v239_v22 = vld [vmem:[#allocation7 + $0x78] sm:$0xff]  ;;  %v236_v29 = vld [vmem:[#allocation7 + $0x60] sm:$0xff]  ;;  %v234_v31 = vld [vmem:[#allocation7 + $0x50] sm:$0xff] }
  0x3b   :  { %524 = vmatprep.subr.mxu0 %v750_v0  ;;  %554 = vmatpush3.msra.mxu1 %v239_v22  ;;  %v235_v30 = vld [vmem:[#allocation7 + $0x58] sm:$0xff]  ;;  %v233_v32 = vld [vmem:[#allocation7 + $0x48] sm:$0xff]  ;;  %v232_v33 = vld [vmem:[#allocation7 + $0x40] sm:$0xff] }
  0x3c   :  { %525 = vmatpush3.msra.mxu0 %v111_v4  ;;  %555 = vmatprep.subr.mxu1 %v750_v0  ;;  %v231_v34 = vld [vmem:[#allocation7 + $0x38] sm:$0xff]  ;;  %v230_v35 = vld [vmem:[#allocation7 + $0x30] sm:$0xff]  ;;  %v229_v36 = vld [vmem:[#allocation7 + $0x28] sm:$0xff] }
  0x3d   :  { %526 = vmatprep.subr.mxu0 %v750_v0  ;;  %556 = vmatpush3.msra.mxu1 %v238_v27  ;;  %v228_v37 = vld [vmem:[#allocation7 + $0x20] sm:$0xff]  ;;  %v227_v38 = vld [vmem:[#allocation7 + $0x18] sm:$0xff]  ;;  %v226_v39 = vld [vmem:[#allocation7 + $0x10] sm:$0xff] }
  0x3e   :  { %527 = vmatpush3.msra.mxu0 %v110_v5  ;;  %557 = vmatprep.subr.mxu1 %v750_v0  ;;  %v225_v40 = vld [vmem:[#allocation7 + $0x8] sm:$0xff]  ;;  %v224_v41 = vld [vmem:[#allocation7] sm:$0xff]  ;;  %v461_v50 = vld [vmem:[%s925_s3] ss:$0 sm:$0xff] }
  0x3f   :  { %528 = vmatprep.subr.mxu0 %v750_v0  ;;  %558 = vmatpush3.msra.mxu1 %v237_v28  ;;  %v462_v52 = vld [vmem:[%s926_s4] ss:$0 sm:$0xff]  ;;  %v363_v2 = vld [vmem:[#allocation8 + $0x70] sm:$0xff]  ;;  %v362_v3 = vld [vmem:[#allocation8 + $0x68] sm:$0xff] }
  0x40   :  { %529 = vmatpush3.msra.mxu0 %v109_v6  ;;  %559 = vmatprep.subr.mxu1 %v750_v0  ;;  %v463_v56 = vld [vmem:[%s928_s6] ss:$0 sm:$0xff]  ;;  %v361_v4 = vld [vmem:[#allocation8 + $0x60] sm:$0xff]  ;;  %v359_v6 = vld [vmem:[#allocation8 + $0x50] sm:$0xff] }
  0x41   :  { %530 = vmatprep.subr.mxu0 %v750_v0  ;;  %560 = vmatpush3.msra.mxu1 %v236_v29  ;;  %v364_v60 = vld [vmem:[#allocation8 + $0x78] sm:$0xff] }
  0x42   :  { %531 = vmatpush3.msra.mxu0 %v108_v7  ;;  %561 = vmatprep.subr.mxu1 %v750_v0  ;;  %v360_v5 = vld [vmem:[#allocation8 + $0x58] sm:$0xff]  ;;  %v358_v7 = vld [vmem:[#allocation8 + $0x48] sm:$0xff] }
  0x43   :  { %532 = vmatprep.subr.mxu0 %v750_v0  ;;  %562 = vmatpush3.msra.mxu1 %v235_v30  ;;  %v465_v27 = vld [vmem:[%s930_s8] ss:$0 sm:$0xff] }
  0x44   :  { %533 = vmatpush3.msra.mxu0 %v107_v8  ;;  %563 = vmatprep.subr.mxu1 %v750_v0  ;;  %v357_v8 = vld [vmem:[#allocation8 + $0x40] sm:$0xff]  ;;  %v466_v30 = vld [vmem:[%s932_s10] ss:$0 sm:$0xff] }
  0x45   :  { %534 = vmatprep.subr.mxu0 %v750_v0  ;;  %564 = vmatpush3.msra.mxu1 %v234_v31 }
  0x46   :  { %535 = vmatpush3.msra.mxu0 %v106_v9  ;;  %565 = vmatprep.subr.mxu1 %v750_v0  ;;  %v356_v9 = vld [vmem:[#allocation8 + $0x38] sm:$0xff] }
  0x47   :  { %536 = vmatprep.subr.mxu0 %v750_v0  ;;  %566 = vmatpush3.msra.mxu1 %v233_v32 }
  0x48   :  { %537 = vmatpush3.msra.mxu0 %v105_v10  ;;  %567 = vmatprep.subr.mxu1 %v750_v0  ;;  %v355_v10 = vld [vmem:[#allocation8 + $0x30] sm:$0xff] }
  0x49   :  { %538 = vmatprep.subr.mxu0 %v750_v0  ;;  %568 = vmatpush3.msra.mxu1 %v232_v33 }
  0x4a   :  { %539 = vmatpush3.msra.mxu0 %v104_v11  ;;  %569 = vmatprep.subr.mxu1 %v750_v0  ;;  %v354_v11 = vld [vmem:[#allocation8 + $0x28] sm:$0xff] }
  0x4b   :  { %540 = vmatprep.subr.mxu0 %v750_v0  ;;  %570 = vmatpush3.msra.mxu1 %v231_v34 }
  0x4c   :  { %541 = vmatpush3.msra.mxu0 %v103_v12  ;;  %571 = vmatprep.subr.mxu1 %v750_v0  ;;  %v353_v12 = vld [vmem:[#allocation8 + $0x20] sm:$0xff] }
  0x4d   :  { %542 = vmatprep.subr.mxu0 %v750_v0  ;;  %572 = vmatpush3.msra.mxu1 %v230_v35 }
  0x4e   :  { %543 = vmatpush3.msra.mxu0 %v102_v13  ;;  %573 = vmatprep.subr.mxu1 %v750_v0  ;;  %v352_v13 = vld [vmem:[#allocation8 + $0x18] sm:$0xff] }
  0x4f   :  { %544 = vmatprep.subr.mxu0 %v750_v0  ;;  %574 = vmatpush3.msra.mxu1 %v229_v36 }
  0x50   :  { %545 = vmatpush3.msra.mxu0 %v101_v14  ;;  %575 = vmatprep.subr.mxu1 %v750_v0  ;;  %v351_v14 = vld [vmem:[#allocation8 + $0x10] sm:$0xff] }
  0x51   :  { %546 = vmatprep.subr.mxu0 %v750_v0  ;;  %576 = vmatpush3.msra.mxu1 %v228_v37 }
  0x52   :  { %547 = vmatpush3.msra.mxu0 %v100_v15  ;;  %577 = vmatprep.subr.mxu1 %v750_v0  ;;  %v350_v15 = vld [vmem:[#allocation8 + $0x8] sm:$0xff] }
  0x53   :  { %548 = vmatprep.subr.mxu0 %v750_v0  ;;  %578 = vmatpush3.msra.mxu1 %v227_v38 }
  0x54   :  { %549 = vmatpush3.msra.mxu0 %v99_v16  ;;  %579 = vmatprep.subr.mxu1 %v750_v0  ;;  %v349_v16 = vld [vmem:[#allocation8] sm:$0xff] }
  0x55   :  { %551 = vmatmul.mubr.f32.vlgmr.msra.gmra.mxu0 %v98_v17  ;;  %588 = vmatprep.subr.mxu0 %v750_v0 }
  0x56   :  { %620 = vmatprep.mubr.msk.f32.mxu0 %vm751_vm0, %v750_v0  ;;  %580 = vmatpush3.msra.mxu1 %v226_v39 }
  0x57   :  { %581 = vmatprep.subr.mxu1 %v750_v0  ;;  %589 = vmatpush3.msra.mxu0 %v364_v60 }
  0x58   :  { %582 = vmatpush3.msra.mxu1 %v225_v40  ;;  %590 = vmatprep.subr.mxu0 %v750_v0 }
  0x59   :  { %583 = vmatprep.subr.mxu1 %v750_v0  ;;  %591 = vmatpush3.msra.mxu0 %v363_v2 }
  0x5a   :  { %584 = vmatpush3.msra.mxu1 %v224_v41  ;;  %592 = vmatprep.subr.mxu0 %v750_v0 }
  0x5b   :  { %593 = vmatpush3.msra.mxu0 %v362_v3 }
  0x5c   :  { %594 = vmatprep.subr.mxu0 %v750_v0 }
  0x5d   :  { %595 = vmatpush3.msra.mxu0 %v361_v4 }
  0x5e   :  { %596 = vmatprep.subr.mxu0 %v750_v0 }
  0x5f   :  { %597 = vmatpush3.msra.mxu0 %v360_v5 }
  0x60   :  { %598 = vmatprep.subr.mxu0 %v750_v0 }
  0x61   :  { %599 = vmatpush3.msra.mxu0 %v359_v6 }
  0x62   :  { %600 = vmatprep.subr.mxu0 %v750_v0 }
  0x63   :  { %601 = vmatpush3.msra.mxu0 %v358_v7 }
  0x64   :  { %602 = vmatprep.subr.mxu0 %v750_v0 }
  0x65   :  { %603 = vmatpush3.msra.mxu0 %v357_v8 }
  0x66   :  { %604 = vmatprep.subr.mxu0 %v750_v0 }
  0x67   :  { %605 = vmatpush3.msra.mxu0 %v356_v9 }
  0x68   :  { %606 = vmatprep.subr.mxu0 %v750_v0 }
  0x69   :  { %607 = vmatpush3.msra.mxu0 %v355_v10 }
  0x6a   :  { %608 = vmatprep.subr.mxu0 %v750_v0 }
  0x6b   :  { %609 = vmatpush3.msra.mxu0 %v354_v11 }
  0x6c   :  { %610 = vmatprep.subr.mxu0 %v750_v0 }
  0x6d   :  { %611 = vmatpush3.msra.mxu0 %v353_v12 }
  0x6e   :  { %612 = vmatprep.subr.mxu0 %v750_v0 }
  0x6f   :  { %613 = vmatpush3.msra.mxu0 %v352_v13 }
  0x70   :  { %614 = vmatprep.subr.mxu0 %v750_v0 }
  0x71   :  { %615 = vmatpush3.msra.mxu0 %v351_v14 }
  0x72   :  { %616 = vmatprep.subr.mxu0 %v750_v0 }
  0x73   :  { %617 = vmatpush3.msra.mxu0 %v350_v15 }
  0x74   :  { %618 = vmatprep.subr.mxu0 %v750_v0 }
  0x75   :  { %619 = vmatpush3.msra.mxu0 %v349_v16 }
 0x115   :  { %v188_v19 = vpop.f32.mrf.mxu0 }
 0x116   :  { %v189_v20 = vadd.f32 %v460_v18, %v188_v19 }
 0x117   :  { %v552_v21 = vpop.f32.mrf.mxu0 }
 0x118   :  { %192 = vadd.xlane.f32.xlu0 %v189_v20 }
 0x1a1   :  { %v193_v23 = vpop.xlane.xlu0 %192 }
 0x1a2   :  { %v194_v24 = vmul.f32 0.015625, %v193_v23 }
 0x1a4   :  { %v195_v25 = vsub.f32 %v189_v20, %v194_v24  ;;  %v199_v42 = vmul.f32 %v194_v24, %v194_v24 }
 0x1a6   :  { %v196_v26 = vmul.f32 %v195_v25, %v195_v25  ;;  %v200_v43 = vmul.f32 64.0, %v199_v42 }
 0x1a8   :  { %197 = vadd.xlane.f32.xlu0 %v196_v26 }
 0x231   :  { %v198_v44 = vpop.xlane.xlu0 %197 }
 0x232   :  { %v201_v45 = vsub.f32 %v198_v44, %v200_v43 }
 0x234   :  { %v202_v46 = vmul.f32 0.015625, %v201_v45 }
 0x236   :  { %v203_v47 = vmax.f32 %v202_v46, 0.0 }
 0x238   :  { %v204_v48 = vadd.f32 1e-05, %v203_v47 }
 0x23a   :  { %632 = vrsqrt.f32 %v204_v48 }
 0x247   :  { %v633_v49 = vpop.eup %632 }
 0x248   :  { %v206_v51 = vmul.f32 %v633_v49, %v195_v25  ;;  %v464_v25 = vld [vmem:[%s929_s7] ss:$0 sm:$0xff]  ;;  %s716_s7 = scalar_lea.vmem %s450_s16, 128 }
 0x249   :  { %p717_p6 = scmp.ne.s32.totalorder %s450_s16, %s716_s7  ;;  %p722_p8 = scmp.lt.s32.totalorder %s716_s7, %s716_s7 }
 0x24a   :  { %v214_v53 = vmul.f32 %v461_v50, %v206_v51 }
 0x24b   :  { %p723_p9 = por %p722_p8, %p721_p7 }
 0x24c   :  { %v222_v54 = vadd.f32 %v462_v52, %v214_v53 }
 0x24d   :  { %p724_p10 = pnand %p723_p9, %p717_p6 }
 0x24e   :  { %v223_v55 = vmax.f32 %v222_v54, 0.0 }
 0x250   :  { %586 = vmatmul.mubr.f32.vlgmr.msra.gmra.mxu1 %v223_v55 }
 0x310   :  { %v313_v57 = vpop.f32.mrf.mxu1 }
 0x311   :  { %v314_v58 = vadd.f32 %v463_v56, %v313_v57 }
 0x312   :  { %v587_v59 = vpop.f32.mrf.mxu1 }
 0x313   :  { %317 = vadd.xlane.f32.xlu1 %v314_v58 }
 0x39c   :  { %v318_v61 = vpop.xlane.xlu1 %317 }
 0x39d   :  { %v319_v62 = vmul.f32 0.015625, %v318_v61 }
 0x39f   :  { %v320_v63 = vsub.f32 %v314_v58, %v319_v62  ;;  %v324_v17 = vmul.f32 %v319_v62, %v319_v62 }
 0x3a1   :  { %v321_v1 = vmul.f32 %v320_v63, %v320_v63  ;;  %v325_v18 = vmul.f32 64.0, %v324_v17 }
 0x3a3   :  { %322 = vadd.xlane.f32.xlu1 %v321_v1 }
 0x42c   :  { %v323_v19 = vpop.xlane.xlu1 %322 }
 0x42d   :  { %v326_v20 = vsub.f32 %v323_v19, %v325_v18 }
 0x42f   :  { %v327_v21 = vmul.f32 0.015625, %v326_v20 }
 0x431   :  { %v328_v22 = vmax.f32 %v327_v21, 0.0 }
 0x433   :  { %v329_v23 = vadd.f32 1e-05, %v328_v22 }
 0x435   :  { %634 = vrsqrt.f32 %v329_v23 }
 0x442   :  { %v635_v24 = vpop.eup %634 }
 0x443   :  { %v331_v26 = vmul.f32 %v635_v24, %v320_v63 }
 0x445   :  { %v339_v0 = vmul.f32 %v464_v25, %v331_v26 }
 0x447   :  { %v347_v28 = vadd.f32 %v465_v27, %v339_v0 }
 0x449   :  { %v348_v29 = vmax.f32 %v347_v28, 0.0 }
 0x44b   :  { %621 = vmatmul.mubr.f32.vlgmr.msra.gmra.mxu0 %v348_v29 }
 0x50b   :  { %v438_v31 = vpop.f32.mrf.mxu0 }
 0x50c   :  { %v439_v32 = vadd.f32 %v466_v30, %v438_v31 }
 0x50d   :  { %v622_v33 = vpop.f32.mrf.mxu0 }
 0x50e   :  { %442 = vst [vmem:[#allocation10] sm:$0xff] %v439_v32 }
 0x50f   :  { %727 = shalt.err (!%p724_p10)
}
 0x510   :  { %452 = dma.vmem_to_hbm [thread:$0]  %s450_s16, 128, %s935_s13, [#allocation4]  }
 0x511   :  { %742 = dma.done.wait [#allocation4], 128  }
 0x512   :  { %743 = vsyncadd [#allocation4], 4294967168 }
 0x513   :  { %456 = vsyncpa [#allocation3], 1 }
 0x514   :  { %457 = vsyncpa [#allocation6], 1 }
 0x515   :  { %458 = vsyncpa [#allocation9], 1 }
 0x516   :  { %459 = vsyncpa [#allocation4], 1 }

</bundles_post_ra>
